<compile_context>
chip_gen: v6e
topology: v6e:2x2x1
jax: 0.10.0
libtpu: 0.0.40
codegen_flags: <defaults>
</compile_context>

<pallas_src>
import jax
import jax.numpy as jnp
from jax.experimental import pallas as pl
from jax.experimental.pallas import tpu as pltpu

_LANES = 128
_TILE_BYTES = 4 * 1024 * 1024   # target per-block footprint (one buffer)
_MIN_GRID_STEPS = 8             # keep pipelining / 2-TC split effective


def _round_up(x, m):
    return ((x + m - 1) // m) * m


def _rayleigh_kernel(coef_ref, x_ref, o_ref):
    # coef_ref: SMEM (4,) float32 -> a, b, c, x0
    a = coef_ref[0]
    b = coef_ref[1]
    c = coef_ref[2]
    x0 = coef_ref[3]
    nb = -b  # fold the negation into a scalar (one fewer vector op per vreg)

    # Load in the source dtype, compute in f32 on the vreg (VPU cast is free
    # compared with an extra HBM pass for a wrapper-side astype).
    x = x_ref[...].astype(jnp.float32)
    d = x - x0
    y = a * x * jnp.exp(nb * d * d) + c
    # TODO(synk): on v7x with bf16 inputs, if VALU ever saturates, keep only
    # the exp argument in f32 and do the a*x*e + c tail in bf16.
    o_ref[...] = y.astype(o_ref.dtype)


def _rayleigh_2d(coef_f32, x2d, out_dtype, sublane_align):
    """Run the kernel on a (rows, 128) slab; returns (rows, 128) of out_dtype."""
    rows = x2d.shape[0]
    itemsize = x2d.dtype.itemsize
    max_tile_rows = max(sublane_align, _TILE_BYTES // (_LANES * itemsize))

    if rows <= sublane_align:
        # Tiny input: the block is the full array (always a legal block shape).
        tile_rows = rows
    else:
        # Aim for >= _MIN_GRID_STEPS steps, tiles a multiple of the native
        # sublane packing, capped at ~_TILE_BYTES per block.
        tile_rows = min(max_tile_rows,
                        _round_up(pl.cdiv(rows, _MIN_GRID_STEPS), sublane_align))
        tile_rows = max(sublane_align,
                        min(tile_rows, (rows // sublane_align) * sublane_align))
    grid = (pl.cdiv(rows, tile_rows),)

    return pl.pallas_call(
        _rayleigh_kernel,
        out_shape=jax.ShapeDtypeStruct((rows, _LANES), out_dtype),
        grid_spec=pltpu.PrefetchScalarGridSpec(
            num_scalar_prefetch=0,
            grid=grid,
            in_specs=[
                pl.BlockSpec(memory_space=pltpu.MemorySpace.SMEM),  # coefficients
                pl.BlockSpec((tile_rows, _LANES), lambda i: (i, 0)),
            ],
            out_specs=pl.BlockSpec((tile_rows, _LANES), lambda i: (i, 0)),
        ),
        compiler_params=pltpu.CompilerParams(
            dimension_semantics=("parallel",),  # megacore / 2-TC sharding
        ),
    )(coef_f32, x2d)


def rayleigh_forward(coefficients, X):
    """y = a * X * exp(-b * (X - x0)**2) + c via a Pallas TPU kernel.

    coefficients: (4,) array -> (a, b, c, x0).  X: any shape.
    Floating X keeps its dtype; integer/bool X returns float32 (like torch's
    type promotion against float parameters).
    """
    coef_f32 = coefficients.astype(jnp.float32)
    orig_shape = X.shape

    if jnp.issubdtype(X.dtype, jnp.floating):
        if X.dtype.itemsize > 4:
            X = X.astype(jnp.float32)
        out_dtype = X.dtype
    else:
        if X.dtype.itemsize > 4:
            X = X.astype(jnp.int32)
        out_dtype = jnp.float32  # kernel upcasts on the vreg, output is f32

    # Native sublane packing: 8 (4-byte), 16 (2-byte), 32 (1-byte) dtypes.
    sublane_align = max(8, 32 // X.dtype.itemsize)
    align = sublane_align * _LANES

    xf = X.reshape(-1)  # reshape of a contiguous array: no copy
    n = xf.shape[0]

    if n % _LANES == 0:
        # Fast path: zero-copy view as a lane-dense (rows, 128) slab.
        out = _rayleigh_2d(coef_f32, xf.reshape(n // _LANES, _LANES),
                           out_dtype, sublane_align)
        return out.reshape(orig_shape)

    # Unaligned length: kernel on the aligned prefix, the small (< align
    # elements) remainder in plain JAX -- avoids full-array pad/slice copies.
    a, b, c, x0 = coef_f32[0], coef_f32[1], coef_f32[2], coef_f32[3]

    def _tail(xt):
        xt = xt.astype(jnp.float32)
        return (a * xt * jnp.exp(-b * (xt - x0) ** 2) + c).astype(out_dtype)

    n_main = (n // align) * align
    if n_main == 0:
        return _tail(xf).reshape(orig_shape)

    y_main = _rayleigh_2d(coef_f32,
                          xf[:n_main].reshape(n_main // _LANES, _LANES),
                          out_dtype, sublane_align).reshape(-1)
    y_tail = _tail(xf[n_main:])
    return jnp.concatenate([y_main, y_tail]).reshape(orig_shape)


def init_coefficients(key, a=None, b=None, c=None, x0=None):
    """Mirror of the PyTorch __init__: Uniform(0, 0.1).sample((4,)) with
    optional overrides for (a, b, c, x0)."""
    w = jax.random.uniform(key, (4,), minval=0.0, maxval=0.1, dtype=jnp.float32)
    for i, v in enumerate([a, b, c, x0]):
        if v is not None:
            w = w.at[i].set(jnp.float32(v))
    return w


def _reference(coeffs, X):
    a, b, c, x0 = [coeffs[i] for i in range(4)]
    xf = X.astype(jnp.float32)
    return a * xf * jnp.exp(-b * (xf - x0) ** 2) + c


if __name__ == "__main__":
    key = jax.random.PRNGKey(0)
    k_param, k_x = jax.random.split(key)

    # Deterministic parameter init (synthetic; no checkpoint load).
    coeffs = init_coefficients(k_param)

    # Test 1: f32, NCHW-like shape (fast lane-aligned path).
    x_f32 = jax.random.normal(k_x, (2, 4, 16, 16), dtype=jnp.float32)
    y = jax.block_until_ready(rayleigh_forward(coeffs, x_f32))
    assert y.shape == x_f32.shape and y.dtype == x_f32.dtype
    assert jnp.allclose(y, _reference(coeffs, x_f32), atol=1e-6, rtol=1e-6)

    # Test 2: bf16 input (16-sublane packing path, full-array block).
    x_bf16 = x_f32.astype(jnp.bfloat16)
    y_bf16 = jax.block_until_ready(rayleigh_forward(coeffs, x_bf16))
    ref_bf16 = _reference(coeffs, x_bf16).astype(jnp.bfloat16)
    assert y_bf16.shape == x_bf16.shape and y_bf16.dtype == jnp.bfloat16
    assert jnp.allclose(y_bf16.astype(jnp.float32), ref_bf16.astype(jnp.float32),
                        atol=2e-2, rtol=2e-2)

    # Test 3: flat length not a multiple of 128 (prefix kernel + JAX tail).
    x_odd = jax.random.normal(jax.random.PRNGKey(1), (5000,), dtype=jnp.float32)
    y_odd = jax.block_until_ready(rayleigh_forward(coeffs, x_odd))
    assert y_odd.shape == x_odd.shape and y_odd.dtype == x_odd.dtype
    assert jnp.allclose(y_odd, _reference(coeffs, x_odd), atol=1e-6, rtol=1e-6)

    print("KERNEL_OK")
</pallas_src>

<mosaic_0001>
module attributes {stable_mosaic.version = 11 : i64} {
  func.func @_rayleigh_kernel(%arg0: i32, %arg1: memref<4xf32, #tpu.memory_space<smem>>, %arg2: memref<8x128xf32, #tpu.memory_space<vmem>>, %arg3: memref<8x128xf32, #tpu.memory_space<vmem>>) attributes {dimension_semantics = [#tpu.dimension_semantics<parallel>], iteration_bounds = array<i64: 2>, scalar_prefetch = 0 : i64, scratch_operands = 0 : i64, tpu.core_type = #tpu.core_type<tc>, window_params = [{transform_indices = @transform_0, window_bounds = array<i64: 4>}, {transform_indices = @transform_1, window_bounds = array<i64: 8, 128>}, {transform_indices = @transform_2, window_bounds = array<i64: 8, 128>}]} {
    %c0 = arith.constant 0 : index
    %0 = memref.load %arg1[%c0] : memref<4xf32, #tpu.memory_space<smem>>
    %c1 = arith.constant 1 : index
    %1 = memref.load %arg1[%c1] : memref<4xf32, #tpu.memory_space<smem>>
    %c2 = arith.constant 2 : index
    %2 = memref.load %arg1[%c2] : memref<4xf32, #tpu.memory_space<smem>>
    %c3 = arith.constant 3 : index
    %3 = memref.load %arg1[%c3] : memref<4xf32, #tpu.memory_space<smem>>
    %cst = arith.constant 0.000000e+00 : f32
    %4 = arith.subf %cst, %1 : f32
    %c0_0 = arith.constant 0 : index
    %c0_1 = arith.constant 0 : index
    %5 = vector.load %arg2[%c0_0, %c0_1] : memref<8x128xf32, #tpu.memory_space<vmem>>, vector<8x128xf32>
    %6 = vector.broadcast %3 : f32 to vector<8x128xf32>
    %7 = arith.subf %5, %6 : vector<8x128xf32>
    %8 = vector.broadcast %0 : f32 to vector<8x128xf32>
    %9 = arith.mulf %8, %5 : vector<8x128xf32>
    %10 = vector.broadcast %4 : f32 to vector<8x128xf32>
    %11 = arith.mulf %10, %7 : vector<8x128xf32>
    %12 = arith.mulf %11, %7 : vector<8x128xf32>
    %13 = math.exp %12 : vector<8x128xf32>
    %14 = arith.mulf %9, %13 : vector<8x128xf32>
    %15 = vector.broadcast %2 : f32 to vector<8x128xf32>
    %16 = arith.addf %14, %15 : vector<8x128xf32>
    %c0_2 = arith.constant 0 : index
    %c0_3 = arith.constant 0 : index
    %17 = vector.load %arg3[%c0_2, %c0_3] : memref<8x128xf32, #tpu.memory_space<vmem>>, vector<8x128xf32>
    tpu.vector_store %arg3[%c0_2, %c0_3], %16 {strides = array<i32>} : memref<8x128xf32, #tpu.memory_space<vmem>>, vector<8x128xf32>,
    return
  }
  func.func @transform_0(%arg0: i32) -> i32 {
    %c0_i32 = arith.constant 0 : i32
    %c0_i32_0 = arith.constant 0 : i32
    return %c0_i32 : i32
  }
  func.func @transform_1(%arg0: i32) -> (i32, i32) {
    %c0_i32 = arith.constant 0 : i32
    %c0_i32_0 = arith.constant 0 : i32
    return %arg0, %c0_i32 : i32, i32
  }
  func.func @transform_2(%arg0: i32) -> (i32, i32) {
    %c0_i32 = arith.constant 0 : i32
    %c0_i32_0 = arith.constant 0 : i32
    return %arg0, %c0_i32 : i32, i32
  }
}

</mosaic_0001>

<bundles_post_ra>
// kernel: tpu_custom_call.1
= control target key start
LH: loop header
LB: loop body
LE: loop exit
PB: predicated region body
PF: predicated region fallthrough
CT: control target
= control target key end

     0   :  { %7 = vsyncpa [#allocation5], 0  ;;  %s641_s0 = inlined_call_operand.hbm [shape: f32[4], index: 0, kind: input, shape index: {}]   ;;  %s642_s1 = inlined_call_operand.hbm [shape: f32[16,128], index: 1, kind: input, shape index: {}]   ;;  %s643_s2 = inlined_call_operand.hbm [shape: f32[16,128], index: 2, kind: output, shape index: {}]  }
   0x1   :  { %8 = vsyncpa [#allocation3], 0 }
   0x2   :  { %10 = vsyncpa [#allocation3 + $0x1], 0 }
   0x3   :  { %11 = vsyncpa [#allocation4], 0 }
   0x4   :  { %13 = vsyncpa [#allocation4 + $0x1], 0  ;;  %s489_s9 = smov 0   ;;  %s491_s10 = smov 0  }
   0x5   :  { %s493_s11 = smov 0   ;;  %s495_s12 = smov 0  }
   0x6 LB: > { %s510_s13 = sadd.s32 4294967295, %s469_s12   ;;  %s286_s14 = sadd.s32 4294967294, %s469_s12   ;;  %s469_s12 = sphi %s495_s12, %s663_s12   ;;  %s465_s11 = sphi %s493_s11, %s662_s11   ;;  %s461_s10 = sphi %s491_s10, %s661_s10   ;;  %s457_s9 = sphi %s489_s9, %s660_s9  }
   0x7   : > { %p60_p0 = scmp.ne.s32.totalorder %s461_s10, %s457_s9  ;;  %p644_p1 = scmp.eq.s32.totalorder %s510_s13, 0 }
   0x8   : > { %p84_p2 = scmp.eq.s32.totalorder %s510_s13, 1  ;;  %p90_p3 = scmp.eq.s32.totalorder %s286_s14, 1 }
   0x9   : > { %p519_p4 = por %p644_p1, %p60_p0  ;;  %p287_p5 = scmp.ge.s32.totalorder %s469_s12, 1 }
   0xa   : > { %p524_p6 = por %p90_p3, %p60_p0  ;;  %p97_p7 = scmp.lt.s32.totalorder %s469_s12, 3 }
   0xb   : > { %s648_s15 = scalar_select %p519_p4, 1, 0 }
   0xc   : > { %s649_s16 = scalar_select %p524_p6, 1, 0 }
   0xd   : > { %p529_p8 = pnand %p287_p5, %p97_p7  ;;  %s535_s18 = sadd.s32 1, %s469_s12  }
   0xe   : > { %s44_s19 = ssub.s32 %s469_s12, %s535_s18  ;;  %s47_s20 = sadd.s32 1, %s465_s11 }
   0xf   : > { %s650_s17 = scalar_select %p529_p8, 1, 0 }
  0x10   : > { %p311_p10 = pneg %p529_p8  ;;  %p45_p12 = scmp.eq.s32.totalorder %s44_s19, 0 }
  0x11   : > { %p54_p13 = scmp.ne.s32.totalorder %s465_s11, %s461_s10  ;;  %p55_p0 = scmp.eq.s32.totalorder %s469_s12, 0 }
  0x12   : > { %p312_p11 = pnand %p311_p10, %p644_p1  ;;  %p324_p3 = scmp.lt.s32.totalorder %s469_s12, 2 }
  0x13   : > { %s471_s21 = smov [#allocation2]   ;;  %p56_p5 = por %p55_p0, %p54_p13 }
  0x14   : > { %314 = dma.hbm_to_smem (!%p312_p11), %s641_s0, 16, %s471_s21, [#allocation5]  }
  0x15   : > { %s552_s24 = scalar_select %p45_p12, %s465_s11, %s47_s20  }
  0x16   : > { %p556_p7 = por %p84_p2, %p54_p13  ;;  %s119_s26 = sand.u32 1, %s465_s11  }
  0x17   : > { %s291_s27 = sshll.u32 %s469_s12, 7  ;;  %s290_s28 = sshll.u32 %s119_s26, 3 }
  0x18   : > { %s651_s25 = scalar_select %p556_p7, 1, 0 }
  0x19   : > { %s565_s3 = scalar_lea.hbm %s642_s1, %s291_s27  ;;  %s123_s4 = scalar_lea.vmem [#allocation6], %s290_s28 }
  0x1a   : > { %s130_s5 = sshll.u32 %s123_s4, 4  ;;  %p567_p10 = pnand %p324_p3, %p56_p5  ;;  %s131_s5 = int_to_ptr.vmem [resolvable:$true] %s130_s5 }
  0x1b   : > { %s120_s7 = scalar_lea.sflag [#allocation3], %s119_s26  ;;  %s373_s8 = scalar_lea.hbm %s565_s3, 128 }
  0x1c   : > { %p374_p2 = scmp.ne.s32.totalorder %s565_s3, %s373_s8  ;;  %p375_p11 = pneg %p567_p10 }
  0x1d   : > { %s378_s20 = scalar_lea.hbm %s642_s1, 256  ;;  %p379_p0 = scmp.lt.s32.totalorder %s565_s3, %s642_s1 }
  0x1e   : > { %p376_p12 = pnand %p375_p11, %p374_p2  ;;  %p380_p3 = scmp.lt.s32.totalorder %s378_s20, %s373_s8 }
  0x20   : > { %p377_p13 = pneg %p376_p12  ;;  %p381_p5 = por %p380_p3, %p379_p0 }
  0x22   : > { %p382_p9 = pnand %p381_p5, %p377_p13 }
  0x24   : > { %385 = shalt.err (!%p382_p9)
}
  0x25   : > { %s386_s23 = scalar_lea.vmem %s131_s5, 128  ;;  %s472_s26 = smov [#allocation6]  }
  0x26   : > { %p387_p1 = scmp.ne.s32.totalorder %s131_s5, %s386_s23  ;;  %s391_s27 = sshll.u32 %s472_s26, 4  ;;  %s392_s27 = int_to_ptr.vmem [resolvable:$false] %s391_s27 }
  0x27   : > { %s393_s28 = scalar_lea.vmem %s392_s27, 256  ;;  %p394_p2 = scmp.lt.s32.totalorder %s131_s5, %s392_s27 }
  0x28   : > { %p389_p6 = pnand %p387_p1, %p375_p11  ;;  %p395_p12 = scmp.lt.s32.totalorder %s393_s28, %s386_s23 }
  0x2a   : > { %p390_p7 = pneg %p389_p6  ;;  %p396_p4 = por %p395_p12, %p394_p2 }
  0x2c   : > { %p397_p8 = pnand %p396_p4, %p390_p7 }
  0x2e   : > { %400 = shalt.err (!%p397_p8)
}
  0x2f   : > { %318 = dma.hbm_to_vmem [thread:$0]  (!%p567_p10), %s565_s3, 128, %s131_s5, %s120_s7  }
  0x30   : > { %p653_p13 = scmp.ne.s32.totalorder %s650_s17, 0 }
  0x31   : > { %p654_p9 = scmp.eq.s32.totalorder (!%p653_p13), %s510_s13, 0 }
  0x32   : > { %139 = sbr.rel (%p653_p13) target bundleno = 109 (0x6d), region = 28 }
  0x37   : > { %444 = dma.done.wait (%p654_p9), [#allocation5], 16   ;;  %p655_p1 = pmov %p654_p9 }
  0x38   : > { %s592_s29 = sand.u32 1, %s461_s10   ;;  %p656_p4 = scmp.ne.s32.totalorder %s648_s15, 0 }
  0x39   : > { %446 = vsyncadd (%p655_p1), [#allocation5], 4294967280  ;;  %s294_s30 = sshll.u32 %s592_s29, 3  ;;  %s146_s4 = scalar_lea.sflag [#allocation3], %s592_s29 }
  0x3a   : > { %s149_s6 = scalar_lea.vmem [#allocation6], %s294_s30 }
  0x3b   : > { %448 = dma.done.wait (%p656_p4), %s146_s4, 128  }
  0x3c   : > { %450 = vsyncadd (%p656_p4), %s146_s4, 4294967168 }
  0x3d   : > { %154 = sfence }
  0x3e   : > { %s296_s17 = sld [smem:[#allocation2 + $0x1]]  ;;  %v176_v0 = vld [vmem:[%s149_s6] sm:$0xff]  ;;  %s170_s15 = scalar_lea.vmem [#allocation7], %s294_s30 }
  0x3f   : > { %s298_s3 = sld [smem:[#allocation2 + $0x3]]  ;;  %s204_s14 = sshll.u32 %s170_s15, 4  ;;  %s601_s14 = int_to_ptr.vmem [resolvable:$true] %s204_s14 }
  0x40   : > { %s171_s7 = sld [smem:[#allocation2]]  ;;  %s300_s19 = sshll.u32 %s510_s13, 7 }
  0x41   : > { %s297_s8 = sld [smem:[#allocation2 + $0x2]]  ;;  %s202_s22 = scalar_lea.hbm %s643_s2, %s300_s19 }
  0x42   : > { %s191_s23 = scalar_lea.sflag [#allocation4], %s592_s29  ;;  %s401_s26 = scalar_lea.vmem %s601_s14, 128 }
  0x43   : > { %p402_p6 = scmp.ne.s32.totalorder %s601_s14, %s401_s26  ;;  %p657_p8 = scmp.ne.s32.totalorder %s651_s25, 0 }
  0x44   : > { %s175_s5 = ssub.f32 0.0, %s296_s17  ;;  %s473_s27 = smov [#allocation7]  }
  0x45   : > { %v177_v1 = vstv %s298_s3  ;;  %p403_p7 = pnand %p402_p6, %p657_p8  ;;  %s405_s13 = sshll.u32 %s473_s27, 4  ;;  %s406_s13 = int_to_ptr.vmem [resolvable:$false] %s405_s13 }
  0x46   : > { %v181_v2 = vstv %s175_s5  ;;  %v178_v3 = vsub.f32 %v176_v0, %v177_v1  ;;  %v179_v7 = vstv %s171_s7  ;;  %s407_s28 = scalar_lea.vmem %s406_s13, 256  ;;  %p408_p11 = scmp.lt.s32.totalorder %s601_s14, %s406_s13 }
  0x47   : > { %v180_v8 = vmul.f32 %v179_v7, %v176_v0  ;;  %v187_v10 = vstv %s297_s8  ;;  %p404_p10 = pneg %p403_p7  ;;  %p409_p0 = scmp.lt.s32.totalorder %s407_s28, %s401_s26 }
  0x48   : > { %v182_v4 = vmul.f32 %v181_v2, %v178_v3 }
  0x49   : > { %p410_p3 = por %p409_p0, %p408_p11 }
  0x4a   : > { %v183_v5 = vmul.f32 %v182_v4, %v178_v3 }
  0x4b   : > { %p411_p5 = pnand %p410_p3, %p404_p10 }
  0x4c   : > { %v184_v6 = vmul.f32 1.442695, %v183_v5 }
  0x4e   : > { %360 = vpow2.f32 %v184_v6 }
  0x5b   : > { %v361_v9 = vpop.eup %360 }
  0x5c   : > { %v186_v11 = vmul.f32 %v361_v9, %v180_v8 }
  0x5e   : > { %v188_v12 = vadd.f32 %v187_v10, %v186_v11 }
  0x60   : > { %189 = vst [vmem:[%s170_s15] sm:$0xff] %v188_v12 }
  0x61   : > { %414 = shalt.err (!%p411_p5)
}
  0x62   : > { %s415_s30 = scalar_lea.hbm %s202_s22, 128  ;;  %s419_s6 = scalar_lea.hbm %s643_s2, 256 }
  0x63   : > { %p416_p2 = scmp.ne.s32.totalorder %s202_s22, %s415_s30  ;;  %p420_p9 = scmp.lt.s32.totalorder %s202_s22, %s643_s2 }
  0x64   : > { %p421_p1 = scmp.lt.s32.totalorder %s419_s6, %s415_s30 }
  0x65   : > { %p417_p12 = pnand %p416_p2, %p657_p8 }
  0x66   : > { %p422_p4 = por %p421_p1, %p420_p9 }
  0x67   : > { %p418_p13 = pneg %p417_p12 }
  0x69   : > { %p423_p6 = pnand %p422_p4, %p418_p13 }
  0x6b   : > { %426 = shalt.err (!%p423_p6)
}
  0x6c   : > { %309 = dma.vmem_to_hbm [thread:$0]  (%p657_p8), %s601_s14, 128, %s202_s22, %s191_s23  }
  0x6d PF: > { %s216_s5 = sand.u32 1, %s457_s9   ;;  %p658_p7 = scmp.ne.s32.totalorder %s649_s16, 0 }
  0x6e   : > { %p659_p10 = scmp.ge.s32.totalorder %s469_s12, 2  ;;  %s217_s7 = scalar_lea.sflag [#allocation4], %s216_s5 }
  0x70   : > { %p320_p11 = pnand %p659_p10, %p658_p7 }
  0x72   : > { %p321_p0 = pneg %p320_p11 }
  0x74   : > { %452 = dma.done.wait (%p321_p0), %s217_s7, 128  }
  0x75   : > { %454 = vsyncadd (%p321_p0), %s217_s7, 4294967168  ;;  %p16_p3 = scmp.ge.s32.totalorder %s535_s18, 4   ;;  %s660_s9 = smov %s461_s10 }
  0x76   : > { %s661_s10 = smov %s465_s11  ;;  %s662_s11 = smov %s552_s24 }
  0x77   : > { %s663_s12 = smov %s535_s18  ;;  %18 = sbr.rel (!%p16_p3) target bundleno = 6 (0x6), region = 78 }
  0x7c   :  { %222 = vsyncpa [#allocation3], 1 }
  0x7d   :  { %224 = vsyncpa [#allocation3 + $0x1], 1 }
  0x7e   :  { %225 = vsyncpa [#allocation4], 1 }
  0x7f   :  { %227 = vsyncpa [#allocation4 + $0x1], 1 }
  0x80   :  { %228 = vsyncpa [#allocation5], 1 }
  0x81   :  { %230 = vsyncpa [#allocation5 + $0x1], 1 }

</bundles_post_ra>
